<compile_context>
chip_gen: v6e
topology: v6e:2x2x1
jax: 0.10.0
libtpu: 0.0.40
codegen_flags: <defaults>
</compile_context>

<pallas_src>
import functools
import math

import numpy as np
import jax
import jax.numpy as jnp
from jax.experimental import pallas as pl
from jax.experimental.pallas import tpu as pltpu

_MIB = 1024 * 1024


def _lcm(a, b):
    return a * b // math.gcd(a, b)


def _erase_cols_kernel(mask_ref, x_ref, o_ref, *, val):
    # mask_ref: (1, L) int32, 1 where the column must be erased (trace-time
    #           constant content; broadcast over sublanes).
    # x_ref / o_ref: one (block_rows, L) tile in VMEM.
    x = x_ref[...]
    erase = mask_ref[...] != 0
    o_ref[...] = jnp.where(erase, jnp.asarray(val, dtype=x.dtype), x)


def down_samp_transf(img, stride=2, val=0, *,
                     block_bytes=6 * _MIB,
                     small_bypass_bytes=_MIB,
                     donate_input=False):
    """Pallas equivalent of down_samp_transf.forward.

    Every `stride`-th entry of the last axis is set to `val`.

    block_bytes        : target per-tile VMEM footprint (live VMEM ~= 4x this).
    small_bypass_bytes : inputs smaller than this skip Pallas (plain XLA path).
    donate_input       : alias the (reshaped) input buffer to the output.  Only
                         enable when the input is genuinely dead (e.g. under
                         jit with donated args); otherwise XLA inserts a
                         defensive copy that doubles HBM traffic.
    """
    stride = int(stride)
    if stride <= 0:
        raise ValueError("stride must be a positive integer")

    orig_shape = img.shape
    dtype = img.dtype
    itemsize = jnp.dtype(dtype).itemsize
    W = int(orig_shape[-1])
    total = math.prod(orig_shape)

    if total == 0:
        return img
    if total * itemsize < small_bypass_bytes:
        # Tiny array: pallas_call + grid-step overhead dominates; use XLA.
        return img.at[..., ::stride].set(jnp.asarray(val, dtype))

    rows_total = total // W

    # ---------- choose a lane-dense (rows, L) view + trace-time column mask ----------
    L = None
    mask_np = None

    # Fast path: stride | W  =>  (flat_index % W) % stride == flat_index % stride,
    # so with stride | L the mask depends only on the in-row lane index.
    if W % stride == 0:
        lane_unit = _lcm(128, stride)
        if total % lane_unit == 0:
            L = lane_unit
            for cand in range(lane_unit, 2048 + 1, lane_unit):
                if total % cand == 0:
                    L = cand
            mask_np = (np.arange(L) % stride) == 0

    # Fused path: fuse k = lcm(W,128)/W consecutive (B*H) rows so each kernel
    # row has a 128-multiple lane count; column of lane l is l % W.
    if mask_np is None:
        k = _lcm(W, 128) // W
        if rows_total % k == 0:
            L = _lcm(W, 128)
            while 2 * L <= 2048 and rows_total % (2 * (L // W)) == 0:
                L *= 2
            mask_np = (np.arange(L) % W) % stride == 0

    # Fallback: full last dim per row (always legal; lane-sparse, rare).
    if mask_np is None:
        L = W
        mask_np = (np.arange(W) % stride) == 0

    rows = total // L
    x2 = img.reshape(rows, L)
    mask = jnp.asarray(mask_np.astype(np.int32).reshape(1, L))

    # ---------- row tiling ----------
    # Native sublane packing: f32 -> 8, bf16/f16 -> 16, int8/fp8 -> 32.
    pack = max(8, 32 // itemsize)
    row_bytes = L * itemsize
    rows_per_block = max(1, block_bytes // row_bytes)
    rows_per_block = max(pack, (rows_per_block // pack) * pack)
    # Ensure >= 2 grid steps when possible so the "parallel" axis can shard
    # across v7x's 2 TensorCores (harmless on single-TC v5e/v6e).
    if rows >= 2 * pack:
        half = max(pack, (((rows + 1) // 2) // pack) * pack)
        rows_per_block = min(rows_per_block, half)
    block_rows = rows if rows_per_block >= rows else rows_per_block
    grid = (pl.cdiv(rows, block_rows),)

    # In/out tiles are separate VMEM buffers and each is double-buffered:
    # live VMEM ~= 4 x tile.  Cap well under v7x's 64 MiB per-TC VMEM.
    block_vmem = block_rows * row_bytes
    vmem_limit = int(min(max(4 * block_vmem + 4 * _MIB, 16 * _MIB), 48 * _MIB))

    kernel = functools.partial(_erase_cols_kernel, val=val)
    io_alias = {1: 0} if donate_input else {}

    out2 = pl.pallas_call(
        kernel,
        out_shape=jax.ShapeDtypeStruct((rows, L), dtype),
        grid_spec=pltpu.PrefetchScalarGridSpec(
            num_scalar_prefetch=0,
            grid=grid,
            in_specs=[
                pl.BlockSpec((1, L), lambda i: (0, 0)),           # column mask (constant block)
                pl.BlockSpec((block_rows, L), lambda i: (i, 0)),  # image tile
            ],
            out_specs=pl.BlockSpec((block_rows, L), lambda i: (i, 0)),
        ),
        compiler_params=pltpu.CompilerParams(
            dimension_semantics=("parallel",),
            vmem_limit_bytes=vmem_limit,
        ),
        input_output_aliases=io_alias,
    )(mask, x2)
    return out2.reshape(orig_shape)


if __name__ == "__main__":
    key = jax.random.PRNGKey(0)

    def ref_fn(x, stride, val):
        # Pure-JAX reference with the same semantics as the PyTorch loop.
        return x.at[..., ::stride].set(jnp.asarray(val, x.dtype))

    # (shape, stride, val, dtype, kwargs) — covers: fast path, non-pow2 stride,
    # multi-step grid with partial last block + donated input, lane-sparse
    # fallback (tiny odd W), fused lane-dense path for odd W, fused path with
    # stride not dividing W, bf16 sublane packing, and the small-input bypass.
    checks = [
        ((2, 4, 16),   2, 0.0,  jnp.float32,  dict(small_bypass_bytes=0)),
        ((2, 8, 48),   3, 0.0,  jnp.float32,  dict(small_bypass_bytes=0)),
        ((2, 80, 128), 2, -1.5, jnp.float32,  dict(small_bypass_bytes=0,
                                                   block_bytes=32 * 1024,
                                                   donate_input=True)),
        ((2, 8, 17),   2, 0.0,  jnp.float32,  dict(small_bypass_bytes=0)),
        ((2, 128, 17), 2, 0.5,  jnp.float32,  dict(small_bypass_bytes=0)),
        ((2, 16, 24),  5, 7.0,  jnp.float32,  dict(small_bypass_bytes=0)),
        ((4, 32, 128), 2, 0.0,  jnp.bfloat16, dict(small_bypass_bytes=0)),
        ((2, 16, 16),  2, 0.0,  jnp.float32,  dict()),  # default bypass path
    ]
    for shape, stride, val, dtype, kwargs in checks:
        key, sub = jax.random.split(key)
        x = jax.random.normal(sub, shape, dtype=jnp.float32).astype(dtype)
        out = jax.block_until_ready(
            down_samp_transf(x, stride=stride, val=val, **kwargs)
        )
        ref = ref_fn(x, stride, val)
        assert out.shape == x.shape and out.dtype == x.dtype
        assert jnp.array_equal(out, ref), f"mismatch for {shape}, stride={stride}"

    print("KERNEL_OK")
</pallas_src>

<mosaic_0001>
module attributes {stable_mosaic.version = 11 : i64} {
  func.func @_erase_cols_kernel(%arg0: i32, %arg1: memref<1x128xi32, #tpu.memory_space<vmem>>, %arg2: memref<1x128xf32, #tpu.memory_space<vmem>>, %arg3: memref<1x128xf32, #tpu.memory_space<vmem>>) attributes {dimension_semantics = [#tpu.dimension_semantics<parallel>], iteration_bounds = array<i64: 1>, scalar_prefetch = 0 : i64, scratch_operands = 0 : i64, tpu.core_type = #tpu.core_type<tc>, window_params = [{pipeline_mode = #tpu.pipeline_mode<synchronous>, transform_indices = @transform_0, window_bounds = array<i64: 1, 128>}, {transform_indices = @transform_1, window_bounds = array<i64: 1, 128>}, {transform_indices = @transform_2, window_bounds = array<i64: 1, 128>}]} {
    %c0 = arith.constant 0 : index
    %c0_0 = arith.constant 0 : index
    %0 = vector.load %arg2[%c0, %c0_0] : memref<1x128xf32, #tpu.memory_space<vmem>>, vector<1x128xf32>
    %c0_1 = arith.constant 0 : index
    %c0_2 = arith.constant 0 : index
    %1 = vector.load %arg1[%c0_1, %c0_2] : memref<1x128xi32, #tpu.memory_space<vmem>>, vector<1x128xi32>
    %c0_i32 = arith.constant 0 : i32
    %2 = vector.broadcast %c0_i32 : i32 to vector<1x128xi32>
    %3 = arith.cmpi ne, %1, %2 : vector<1x128xi32>
    %cst = arith.constant 0.000000e+00 : f32
    %4 = vector.broadcast %cst : f32 to vector<1x128xf32>
    %5 = arith.select %3, %4, %0 : vector<1x128xi1>, vector<1x128xf32>
    %c0_3 = arith.constant 0 : index
    %c0_4 = arith.constant 0 : index
    %6 = vector.load %arg3[%c0_3, %c0_4] : memref<1x128xf32, #tpu.memory_space<vmem>>, vector<1x128xf32>
    tpu.vector_store %arg3[%c0_3, %c0_4], %5 {strides = array<i32>} : memref<1x128xf32, #tpu.memory_space<vmem>>, vector<1x128xf32>,
    return
  }
  func.func @transform_0(%arg0: i32) -> (i32, i32) {
    %c0_i32 = arith.constant 0 : i32
    %c0_i32_0 = arith.constant 0 : i32
    %c0_i32_1 = arith.constant 0 : i32
    return %c0_i32, %c0_i32_0 : i32, i32
  }
  func.func @transform_1(%arg0: i32) -> (i32, i32) {
    %c0_i32 = arith.constant 0 : i32
    %c0_i32_0 = arith.constant 0 : i32
    return %arg0, %c0_i32 : i32, i32
  }
  func.func @transform_2(%arg0: i32) -> (i32, i32) {
    %c0_i32 = arith.constant 0 : i32
    %c0_i32_0 = arith.constant 0 : i32
    return %arg0, %c0_i32 : i32, i32
  }
}

</mosaic_0001>

<bundles_post_ra>
// kernel: tpu_custom_call.1
= control target key start
LH: loop header
LB: loop body
LE: loop exit
PB: predicated region body
PF: predicated region fallthrough
CT: control target
= control target key end

     0   :  { %7 = vsyncpa [#allocation3], 0  ;;  %s116_s0 = inlined_call_operand.hbm [shape: s32[1,128], index: 0, kind: input, shape index: {}]   ;;  %s117_s1 = inlined_call_operand.vmem [shape: f32[1,128], index: 1, kind: input, shape index: {}]   ;;  %s118_s2 = inlined_call_operand.hbm [shape: f32[1,128], index: 2, kind: output, shape index: {}]  }
   0x1   :  { %8 = vsyncpa [#allocation4], 0  ;;  %s90_s9 = smov [#allocation2]  }
   0x2   :  { %s15_s10 = sshll.u32 %s90_s9, 4  ;;  %s16_s10 = int_to_ptr.vmem [resolvable:$true] %s15_s10 }
   0x3   :  { %s54_s11 = scalar_lea.vmem %s16_s10, 16  ;;  %s58_s12 = scalar_lea.vmem %s16_s10, 32 }
   0x4   :  { %p55_p0 = scmp.ne.s32.totalorder %s16_s10, %s54_s11  ;;  %p59_p1 = scmp.lt.s32.totalorder %s16_s10, %s16_s10 }
   0x5   :  { %p60_p2 = scmp.lt.s32.totalorder %s58_s12, %s54_s11 }
   0x7   :  { %p61_p3 = por %p60_p2, %p59_p1 }
   0x9   :  { %p62_p4 = pnand %p61_p3, %p55_p0 }
   0xb   :  { %65 = shalt.err (!%p62_p4)
}
   0xc   :  { %18 = dma.hbm_to_vmem [thread:$0]  %s116_s0, 16, %s16_s10, [#allocation3]  }
   0xd   :  { %86 = dma.done.wait [#allocation3], 16  }
   0xe   :  { %87 = vsyncadd [#allocation3], 4294967280  ;;  %s91_s15 = smov [#allocation5]   ;;  %v24_v0 = vld [vmem:[%s117_s1] sm:$0x1] }
   0xf   :  { %s35_s16 = sshll.u32 %s91_s15, 4  ;;  %v25_v1 = vld [vmem:[#allocation2] sm:$0x1]  ;;  %s36_s16 = int_to_ptr.vmem [resolvable:$true] %s35_s16 }
  0x10   :  { %vm26_vm0 = vcmp.ne.s32.totalorder %v25_v1, 0  ;;  %s66_s19 = scalar_lea.vmem %s36_s16, 16  ;;  %s70_s20 = scalar_lea.vmem %s36_s16, 32 }
  0x11   :  { %v27_v2 = vsel %vm26_vm0, 0.0, %v24_v0  ;;  %p67_p5 = scmp.ne.s32.totalorder %s36_s16, %s66_s19  ;;  %p71_p6 = scmp.lt.s32.totalorder %s36_s16, %s36_s16 }
  0x12   :  { %28 = vst [vmem:[#allocation5] sm:$0x1] %v27_v2  ;;  %p72_p7 = scmp.lt.s32.totalorder %s70_s20, %s66_s19 }
  0x14   :  { %p73_p8 = por %p72_p7, %p71_p6 }
  0x16   :  { %p74_p9 = pnand %p73_p8, %p67_p5 }
  0x18   :  { %77 = shalt.err (!%p74_p9)
}
  0x19   :  { %38 = dma.vmem_to_hbm [thread:$0]  %s36_s16, 16, %s118_s2, [#allocation4]  }
  0x1a   :  { %88 = dma.done.wait [#allocation4], 16  }
  0x1b   :  { %89 = vsyncadd [#allocation4], 4294967280 }
  0x1c   :  { %42 = vsyncpa [#allocation3], 1 }
  0x1d   :  { %43 = vsyncpa [#allocation4], 1 }

</bundles_post_ra>
